<compile_context>
chip_gen: v7x
topology: tpu7x:2x2x1
jax: 0.10.0
libtpu: 0.0.40
codegen_flags: <defaults>
</compile_context>

<pallas_src>
import functools

import jax
import jax.numpy as jnp
from jax.experimental import pallas as pl
from jax.experimental.pallas import tpu as pltpu

HIDDEN_DIMS = (128, 256, 128)

LANE = 128            # 128-lane alignment for large batch tiles (MXU M dim)
SUBLANE = 16          # bf16 sublane packing for small batch tiles
MAX_BATCH_TILE = 2048 # working set ~8 MB at 2048 -- fits 32 MiB scoped VMEM
VMEM_LIMIT_BYTES = 32 * 1024 * 1024  # safe on v5e/v6e (128 MiB) and v7x (64 MiB)


def _round_up(n, m):
    return (n + m - 1) // m * m


def _mlp_kernel(x_ref,
                w1_ref, b1_ref,
                w2_ref, b2_ref,
                w3_ref, b3_ref,
                w4_ref, b4_ref,
                o_ref):
    """Fused MLP: (Linear + ReLU) x 3 followed by a final Linear.

    One batch tile of x plus all (bf16) weights live in VMEM; matmuls run on
    the MXU with f32 accumulation, bias-add / ReLU / casts in f32 on the VPU.
    """
    x = x_ref[...].astype(jnp.bfloat16)          # in-kernel cast (VPU has slack)

    h = jnp.dot(x, w1_ref[...], preferred_element_type=jnp.float32)
    h = jnp.maximum(h + b1_ref[...], 0.0).astype(jnp.bfloat16)

    h = jnp.dot(h, w2_ref[...], preferred_element_type=jnp.float32)
    h = jnp.maximum(h + b2_ref[...], 0.0).astype(jnp.bfloat16)

    h = jnp.dot(h, w3_ref[...], preferred_element_type=jnp.float32)
    h = jnp.maximum(h + b3_ref[...], 0.0).astype(jnp.bfloat16)

    h = jnp.dot(h, w4_ref[...], preferred_element_type=jnp.float32)
    o_ref[...] = (h + b4_ref[...]).astype(o_ref.dtype)


def _choose_batch_tile(B, requested):
    """MXU-friendly batch tile.

    - B <= tile: single grid step, just bf16-sublane (16) aligned.
    - Large B: 128-aligned (fills the MXU M dim) and nudged so the grid has an
      even number of steps -> both v7x TensorCores get balanced work under
      dimension_semantics=('parallel',).
    - Capped at MAX_BATCH_TILE so the VMEM working set stays inside the
      explicit 32 MiB scoped budget on every generation.
    """
    tile = max(SUBLANE, min(requested, MAX_BATCH_TILE))
    if B <= tile:
        return _round_up(B, SUBLANE)
    tile = _round_up(tile, LANE)
    steps = pl.cdiv(B, tile)
    if steps % 2:  # prefer an even step count for megacore load balance
        steps += 1
        tile = _round_up(pl.cdiv(B, steps), LANE)
    return max(tile, LANE)


def prepare_params(params):
    """One-time prep: weights -> bf16 (MXU operand dtype); biases stay f32."""
    return [(w.astype(jnp.bfloat16), b.astype(jnp.float32)) for w, b in params]


@functools.partial(jax.jit, static_argnames=("batch_tile",))
def mlp_forward(x, params, *, batch_tile=2048):
    """x: (B, in_dim) f32.  params: list of (W_(in,out) bf16, b_(1,out) f32)."""
    B, in_dim = x.shape
    (w1, b1), (w2, b2), (w3, b3), (w4, b4) = params
    out_dim = w4.shape[1]

    tile = _choose_batch_tile(B, batch_tile)
    grid = (pl.cdiv(B, tile),)

    def full_spec(arr):
        # Whole (small) array resident in VMEM at every grid step.
        # (pipeline_mode=pl.Buffered(1) would drop the dead second buffer, but
        #  the ~170 KB saved is irrelevant at this working-set size.)
        return pl.BlockSpec(arr.shape, lambda i: (0,) * arr.ndim)

    out = pl.pallas_call(
        _mlp_kernel,
        out_shape=jax.ShapeDtypeStruct((B, out_dim), jnp.float32),
        grid_spec=pltpu.PrefetchScalarGridSpec(
            num_scalar_prefetch=0,
            grid=grid,
            in_specs=[
                pl.BlockSpec((tile, in_dim), lambda i: (i, 0)),
                full_spec(w1), full_spec(b1),
                full_spec(w2), full_spec(b2),
                full_spec(w3), full_spec(b3),
                full_spec(w4), full_spec(b4),
            ],
            # Output block spans the full (unpadded) last dim: contiguous HBM
            # DMA, 8x less writeback than the old 128-lane f32 slab.
            out_specs=pl.BlockSpec((tile, out_dim), lambda i: (i, 0)),
        ),
        compiler_params=pltpu.CompilerParams(
            dimension_semantics=("parallel",),
            vmem_limit_bytes=VMEM_LIMIT_BYTES),
    )(x, w1, b1, w2, b2, w3, b3, w4, b4)
    return out


def init_mlp_params(key, in_dim, hidden_dims, out_dim, dtype=jnp.float32):
    """Mirrors nn.Linear default init: U(-1/sqrt(fan_in), +1/sqrt(fan_in)).

    Weights are stored transposed, i.e. (in_features, out_features).
    """
    dims = (in_dim,) + tuple(hidden_dims) + (out_dim,)
    params = []
    for fan_in, fan_out in zip(dims[:-1], dims[1:]):
        key, kw, kb = jax.random.split(key, 3)
        bound = 1.0 / (fan_in ** 0.5)
        w = jax.random.uniform(kw, (fan_in, fan_out), dtype, -bound, bound)
        b = jax.random.uniform(kb, (1, fan_out), dtype, -bound, bound)
        params.append((w, b))
    return params


def mlp_reference_f32(x, params):
    """Pure-f32 reference (matches the PyTorch module's math)."""
    h = x
    for i, (w, b) in enumerate(params):
        h = h @ w.astype(jnp.float32) + b
        if i < len(params) - 1:
            h = jnp.maximum(h, 0.0)
    return h


def mlp_reference_bf16(x, params):
    """Reference matching the kernel's numerics (bf16 operands, f32 accum)."""
    h = x.astype(jnp.bfloat16)
    for i, (w, b) in enumerate(params):
        h = jnp.dot(h, w.astype(jnp.bfloat16),
                    preferred_element_type=jnp.float32) + b
        if i < len(params) - 1:
            h = jnp.maximum(h, 0.0).astype(jnp.bfloat16)
    return h


if __name__ == "__main__":
    key = jax.random.PRNGKey(0)
    in_dim, out_dim = 32, 16
    kx, kp = jax.random.split(key)
    params_f32 = init_mlp_params(kp, in_dim, HIDDEN_DIMS, out_dim)
    params = prepare_params(params_f32)  # bf16 weights, done once

    def check(batch, batch_tile):
        x = jax.random.normal(jax.random.fold_in(kx, batch),
                              (batch, in_dim), jnp.float32)
        out = jax.block_until_ready(mlp_forward(x, params,
                                                batch_tile=batch_tile))
        assert out.shape == (batch, out_dim)
        assert out.dtype == jnp.float32
        ref_match = mlp_reference_bf16(x, params_f32)  # same mixed numerics
        ref_f32 = mlp_reference_f32(x, params_f32)     # module-exact f32 math
        assert jnp.allclose(out, ref_match, atol=1e-2, rtol=1e-2), \
            float(jnp.max(jnp.abs(out - ref_match)))
        assert jnp.allclose(out, ref_f32, atol=5e-2, rtol=5e-2), \
            float(jnp.max(jnp.abs(out - ref_f32)))

    # Small, non-tile-aligned batch: single-step grid + ragged partial block.
    check(batch=10, batch_tile=2048)
    # Multi-step grid with a ragged last tile (exercises partial-block write).
    check(batch=300, batch_tile=128)

    print("KERNEL_OK")
</pallas_src>

<mosaic_0001>
module attributes {stable_mosaic.version = 11 : i64} {
  func.func @_mlp_kernel(%arg0: i32, %arg1: memref<16x32xf32, #tpu.memory_space<vmem>>, %arg2: memref<32x128xbf16, #tpu.memory_space<vmem>>, %arg3: memref<1x128xf32, #tpu.memory_space<vmem>>, %arg4: memref<128x256xbf16, #tpu.memory_space<vmem>>, %arg5: memref<1x256xf32, #tpu.memory_space<vmem>>, %arg6: memref<256x128xbf16, #tpu.memory_space<vmem>>, %arg7: memref<1x128xf32, #tpu.memory_space<vmem>>, %arg8: memref<128x16xbf16, #tpu.memory_space<vmem>>, %arg9: memref<1x16xf32, #tpu.memory_space<vmem>>, %arg10: memref<16x16xf32, #tpu.memory_space<vmem>>) attributes {dimension_semantics = [#tpu.dimension_semantics<parallel>], iteration_bounds = array<i64: 1>, scalar_prefetch = 0 : i64, scratch_operands = 0 : i64, tpu.core_type = #tpu.core_type<tc>, window_params = [{transform_indices = @transform_0, window_bounds = array<i64: 16, 32>}, {pipeline_mode = #tpu.pipeline_mode<synchronous>, transform_indices = @transform_1, window_bounds = array<i64: 32, 128>}, {pipeline_mode = #tpu.pipeline_mode<synchronous>, transform_indices = @transform_2, window_bounds = array<i64: 1, 128>}, {pipeline_mode = #tpu.pipeline_mode<synchronous>, transform_indices = @transform_3, window_bounds = array<i64: 128, 256>}, {pipeline_mode = #tpu.pipeline_mode<synchronous>, transform_indices = @transform_4, window_bounds = array<i64: 1, 256>}, {pipeline_mode = #tpu.pipeline_mode<synchronous>, transform_indices = @transform_5, window_bounds = array<i64: 256, 128>}, {pipeline_mode = #tpu.pipeline_mode<synchronous>, transform_indices = @transform_6, window_bounds = array<i64: 1, 128>}, {pipeline_mode = #tpu.pipeline_mode<synchronous>, transform_indices = @transform_7, window_bounds = array<i64: 128, 16>}, {pipeline_mode = #tpu.pipeline_mode<synchronous>, transform_indices = @transform_8, window_bounds = array<i64: 1, 16>}, {transform_indices = @transform_9, window_bounds = array<i64: 16, 16>}]} {
    %c0 = arith.constant 0 : index
    %c0_0 = arith.constant 0 : index
    %0 = vector.load %arg1[%c0, %c0_0] : memref<16x32xf32, #tpu.memory_space<vmem>>, vector<16x32xf32>
    %1 = arith.truncf %0 : vector<16x32xf32> to vector<16x32xbf16>
    %c0_1 = arith.constant 0 : index
    %c0_2 = arith.constant 0 : index
    %2 = vector.load %arg2[%c0_1, %c0_2] : memref<32x128xbf16, #tpu.memory_space<vmem>>, vector<32x128xbf16>
    %cst = arith.constant dense<0.000000e+00> : vector<16x128xf32>
    %3 = tpu.matmul %1, %2, %cst {dimension_numbers = #tpu.dot_dimension_numbers<[1], [0], [0], [1], [0, 0, 1, 1], [], []>} : vector<16x32xbf16>, vector<32x128xbf16>, vector<16x128xf32> -> vector<16x128xf32>
    %c0_3 = arith.constant 0 : index
    %c0_4 = arith.constant 0 : index
    %4 = vector.load %arg3[%c0_3, %c0_4] : memref<1x128xf32, #tpu.memory_space<vmem>>, vector<1x128xf32>
    %5 = vector.broadcast %4 : vector<1x128xf32> to vector<16x128xf32>
    %6 = arith.addf %3, %5 : vector<16x128xf32>
    %cst_5 = arith.constant 0.000000e+00 : f32
    %7 = vector.broadcast %cst_5 : f32 to vector<16x128xf32>
    %8 = arith.maximumf %6, %7 : vector<16x128xf32>
    %9 = arith.truncf %8 : vector<16x128xf32> to vector<16x128xbf16>
    %c0_6 = arith.constant 0 : index
    %c0_7 = arith.constant 0 : index
    %10 = vector.load %arg4[%c0_6, %c0_7] : memref<128x256xbf16, #tpu.memory_space<vmem>>, vector<128x256xbf16>
    %cst_8 = arith.constant dense<0.000000e+00> : vector<16x256xf32>
    %11 = tpu.matmul %9, %10, %cst_8 {dimension_numbers = #tpu.dot_dimension_numbers<[1], [0], [0], [1], [0, 0, 1, 1], [], []>} : vector<16x128xbf16>, vector<128x256xbf16>, vector<16x256xf32> -> vector<16x256xf32>
    %c0_9 = arith.constant 0 : index
    %c0_10 = arith.constant 0 : index
    %12 = vector.load %arg5[%c0_9, %c0_10] : memref<1x256xf32, #tpu.memory_space<vmem>>, vector<1x256xf32>
    %13 = vector.broadcast %12 : vector<1x256xf32> to vector<16x256xf32>
    %14 = arith.addf %11, %13 : vector<16x256xf32>
    %cst_11 = arith.constant 0.000000e+00 : f32
    %15 = vector.broadcast %cst_11 : f32 to vector<16x256xf32>
    %16 = arith.maximumf %14, %15 : vector<16x256xf32>
    %17 = arith.truncf %16 : vector<16x256xf32> to vector<16x256xbf16>
    %c0_12 = arith.constant 0 : index
    %c0_13 = arith.constant 0 : index
    %18 = vector.load %arg6[%c0_12, %c0_13] : memref<256x128xbf16, #tpu.memory_space<vmem>>, vector<256x128xbf16>
    %cst_14 = arith.constant dense<0.000000e+00> : vector<16x128xf32>
    %19 = tpu.matmul %17, %18, %cst_14 {dimension_numbers = #tpu.dot_dimension_numbers<[1], [0], [0], [1], [0, 0, 1, 1], [], []>} : vector<16x256xbf16>, vector<256x128xbf16>, vector<16x128xf32> -> vector<16x128xf32>
    %c0_15 = arith.constant 0 : index
    %c0_16 = arith.constant 0 : index
    %20 = vector.load %arg7[%c0_15, %c0_16] : memref<1x128xf32, #tpu.memory_space<vmem>>, vector<1x128xf32>
    %21 = vector.broadcast %20 : vector<1x128xf32> to vector<16x128xf32>
    %22 = arith.addf %19, %21 : vector<16x128xf32>
    %cst_17 = arith.constant 0.000000e+00 : f32
    %23 = vector.broadcast %cst_17 : f32 to vector<16x128xf32>
    %24 = arith.maximumf %22, %23 : vector<16x128xf32>
    %25 = arith.truncf %24 : vector<16x128xf32> to vector<16x128xbf16>
    %c0_18 = arith.constant 0 : index
    %c0_19 = arith.constant 0 : index
    %26 = vector.load %arg8[%c0_18, %c0_19] : memref<128x16xbf16, #tpu.memory_space<vmem>>, vector<128x16xbf16>
    %cst_20 = arith.constant dense<0.000000e+00> : vector<16x16xf32>
    %27 = tpu.matmul %25, %26, %cst_20 {dimension_numbers = #tpu.dot_dimension_numbers<[1], [0], [0], [1], [0, 0, 1, 1], [], []>} : vector<16x128xbf16>, vector<128x16xbf16>, vector<16x16xf32> -> vector<16x16xf32>
    %c0_21 = arith.constant 0 : index
    %c0_22 = arith.constant 0 : index
    %28 = vector.load %arg9[%c0_21, %c0_22] : memref<1x16xf32, #tpu.memory_space<vmem>>, vector<1x16xf32>
    %29 = vector.broadcast %28 : vector<1x16xf32> to vector<16x16xf32>
    %30 = arith.addf %27, %29 : vector<16x16xf32>
    %c0_23 = arith.constant 0 : index
    %c0_24 = arith.constant 0 : index
    %31 = vector.load %arg10[%c0_23, %c0_24] : memref<16x16xf32, #tpu.memory_space<vmem>>, vector<16x16xf32>
    tpu.vector_store %arg10[%c0_23, %c0_24], %30 {strides = array<i32>} : memref<16x16xf32, #tpu.memory_space<vmem>>, vector<16x16xf32>,
    return
  }
  func.func @transform_0(%arg0: i32) -> (i32, i32) {
    %c0_i32 = arith.constant 0 : i32
    %c0_i32_0 = arith.constant 0 : i32
    return %arg0, %c0_i32 : i32, i32
  }
  func.func @transform_1(%arg0: i32) -> (i32, i32) {
    %c0_i32 = arith.constant 0 : i32
    %c0_i32_0 = arith.constant 0 : i32
    %c0_i32_1 = arith.constant 0 : i32
    return %c0_i32, %c0_i32_0 : i32, i32
  }
  func.func @transform_2(%arg0: i32) -> (i32, i32) {
    %c0_i32 = arith.constant 0 : i32
    %c0_i32_0 = arith.constant 0 : i32
    %c0_i32_1 = arith.constant 0 : i32
    return %c0_i32, %c0_i32_0 : i32, i32
  }
  func.func @transform_3(%arg0: i32) -> (i32, i32) {
    %c0_i32 = arith.constant 0 : i32
    %c0_i32_0 = arith.constant 0 : i32
    %c0_i32_1 = arith.constant 0 : i32
    return %c0_i32, %c0_i32_0 : i32, i32
  }
  func.func @transform_4(%arg0: i32) -> (i32, i32) {
    %c0_i32 = arith.constant 0 : i32
    %c0_i32_0 = arith.constant 0 : i32
    %c0_i32_1 = arith.constant 0 : i32
    return %c0_i32, %c0_i32_0 : i32, i32
  }
  func.func @transform_5(%arg0: i32) -> (i32, i32) {
    %c0_i32 = arith.constant 0 : i32
    %c0_i32_0 = arith.constant 0 : i32
    %c0_i32_1 = arith.constant 0 : i32
    return %c0_i32, %c0_i32_0 : i32, i32
  }
  func.func @transform_6(%arg0: i32) -> (i32, i32) {
    %c0_i32 = arith.constant 0 : i32
    %c0_i32_0 = arith.constant 0 : i32
    %c0_i32_1 = arith.constant 0 : i32
    return %c0_i32, %c0_i32_0 : i32, i32
  }
  func.func @transform_7(%arg0: i32) -> (i32, i32) {
    %c0_i32 = arith.constant 0 : i32
    %c0_i32_0 = arith.constant 0 : i32
    %c0_i32_1 = arith.constant 0 : i32
    return %c0_i32, %c0_i32_0 : i32, i32
  }
  func.func @transform_8(%arg0: i32) -> (i32, i32) {
    %c0_i32 = arith.constant 0 : i32
    %c0_i32_0 = arith.constant 0 : i32
    %c0_i32_1 = arith.constant 0 : i32
    return %c0_i32, %c0_i32_0 : i32, i32
  }
  func.func @transform_9(%arg0: i32) -> (i32, i32) {
    %c0_i32 = arith.constant 0 : i32
    %c0_i32_0 = arith.constant 0 : i32
    return %arg0, %c0_i32 : i32, i32
  }
}

</mosaic_0001>

<bundles_post_ra>
// kernel: mlp_forward.1
= control target key start
LH: loop header
LB: loop body
LE: loop exit
PB: predicated region body
PF: predicated region fallthrough
CT: control target
= control target key end

     0   :  { %14 = vsyncpa [#allocation3], 0  ;;  %s1009_s0 = inlined_call_operand.vmem [shape: f32[10,32], index: 0, kind: input, shape index: {}]   ;;  %s1010_s1 = inlined_call_operand.vmem [shape: bf16[32,128], index: 1, kind: input, shape index: {}]   ;;  %s1011_s2 = inlined_call_operand.vmem [shape: f32[1,128], index: 2, kind: input, shape index: {}]   ;;  %s1012_s3 = inlined_call_operand.hbm [shape: bf16[128,256], index: 3, kind: input, shape index: {}]   ;;  %s1013_s4 = inlined_call_operand.vmem [shape: f32[1,256], index: 4, kind: input, shape index: {}]   ;;  %s1014_s5 = inlined_call_operand.hbm [shape: bf16[256,128], index: 5, kind: input, shape index: {}]   ;;  %s1015_s6 = inlined_call_operand.vmem [shape: f32[1,128], index: 6, kind: input, shape index: {}]   ;;  %s1016_s7 = inlined_call_operand.vmem [shape: bf16[128,16], index: 7, kind: input, shape index: {}]   ;;  %s1017_s8 = inlined_call_operand.vmem [shape: f32[1,16], index: 8, kind: input, shape index: {}]   ;;  %s1018_s9 = inlined_call_operand.hbm [shape: f32[10,16], index: 9, kind: output, shape index: {}]  }
   0x1   :  { %15 = vsyncpa [#allocation6], 0 }
   0x2   :  { %16 = vsyncpa [#allocation4], 0  ;;  %s845_s30 = smov [#allocation2]   ;;  %s773_s13 = scalar_lea.hbm %s1012_s3, 2048 }
   0x3   :  { %s28_s10 = sshll.u32 %s845_s30, 4  ;;  %p774_p0 = scmp.ne.s32.totalorder %s1012_s3, %s773_s13  ;;  %s29_s10 = int_to_ptr.vmem [resolvable:$true] %s28_s10 }
   0x4   :  { %p777_p1 = scmp.lt.u32.totalorder %s773_s13, %s1012_s3 }
   0x6   :  { %p779_p2 = pnand %p777_p1, %p774_p0 }
   0x8   :  { %782 = shalt.err (!%p779_p2)
}
   0x9   :  { %s783_s18 = scalar_lea.vmem %s29_s10, 2048  ;;  %p788_p4 = scmp.lt.s32.totalorder %s29_s10, %s29_s10 }
   0xa   :  { %p784_p3 = scmp.ne.s32.totalorder %s29_s10, %s783_s18  ;;  %p789_p5 = scmp.lt.s32.totalorder %s783_s18, %s783_s18 }
   0xc   :  { %p790_p6 = por %p789_p5, %p788_p4 }
   0xe   :  { %p791_p7 = pnand %p790_p6, %p784_p3 }
  0x10   :  { %794 = shalt.err (!%p791_p7)
}
  0x11   :  { %s846_s19 = smov 128   ;;  %s847_s20 = smov 8  }
  0x12   :  { %34 = dma.hbm_to_vmem [thread:$0]  %s1012_s3, 2048, %s29_s10, [#allocation3], %s846_s19, %s846_s19, %s847_s20  }
  0x13   :  { %s848_s23 = smov [#allocation5]   ;;  %s795_s27 = scalar_lea.hbm %s1014_s5, 2048 }
  0x14   :  { %s42_s24 = sshll.u32 %s848_s23, 4  ;;  %p796_p8 = scmp.ne.s32.totalorder %s1014_s5, %s795_s27  ;;  %s43_s24 = int_to_ptr.vmem [resolvable:$true] %s42_s24 }
  0x15   :  { %p799_p9 = scmp.lt.u32.totalorder %s795_s27, %s1014_s5 }
  0x17   :  { %p801_p10 = pnand %p799_p9, %p796_p8 }
  0x19   :  { %804 = shalt.err (!%p801_p10)
}
  0x1a   :  { %s805_s12 = scalar_lea.vmem %s43_s24, 2048  ;;  %p810_p12 = scmp.lt.s32.totalorder %s43_s24, %s43_s24 }
  0x1b   :  { %p806_p11 = scmp.ne.s32.totalorder %s43_s24, %s805_s12  ;;  %p811_p13 = scmp.lt.s32.totalorder %s805_s12, %s805_s12 }
  0x1d   :  { %p812_p0 = por %p811_p13, %p810_p12 }
  0x1f   :  { %p813_p1 = pnand %p812_p0, %p806_p11 }
  0x21   :  { %816 = shalt.err (!%p813_p1)
}
  0x22   :  { %s849_s3 = smov 64   ;;  %s850_s10 = smov 4  }
  0x23   :  { %48 = dma.hbm_to_vmem [thread:$0]  %s1014_s5, 2048, %s43_s24, [#allocation6], %s849_s3, %s849_s3, %s850_s10  }
  0x24   :  { %839 = dma.done.wait [#allocation3], 2048  }
  0x25   :  { %840 = vsyncadd [#allocation3], 4294965248 }
  0x26   :  { %841 = dma.done.wait [#allocation6], 2048  }
  0x27   :  { %842 = vsyncadd [#allocation6], 4294965248  ;;  %v851_v0 = vmov 0.0   ;;  %vm852_vm0 = vmmov 0   ;;  %v723_v1 = vld [vmem:[%s1010_s1] sm:$0xff]   ;;  %v724_v2 = vld [vmem:[%s1010_s1 + $0x8] sm:$0xff]   ;;  %v154_v54 = vlaneseq }
  0x28   :  { %685 = vmatprep.subr.bf16.mxu0 %v851_v0  ;;  %689 = vmatprep.mubr.msk.bf16.mxu0 %vm852_vm0, %v851_v0  ;;  %v62_v3 = vld [vmem:[%s1009_s0] sm:$0xff]  ;;  %v63_v4 = vld [vmem:[%s1009_s0 + $0x8] sm:$0xff]  ;;  %v728_v7 = vld [vmem:[#allocation2 + $0x14] ss:$8 sps:$4 sm:$0xff]   ;;  %vm88_vm1 = vcmask 261120   ;;  %v853_v22 = vmov 0  }
  0x29   :  { %686 = vmatpush3.bf16.msra.mxu0 %v723_v1  ;;  %v725_v5 = vld [vmem:[#allocation2 + $0x4] ss:$8 sps:$4 sm:$0xff]   ;;  %v727_v6 = vld [vmem:[#allocation2] ss:$8 sps:$4 sm:$0xff]   ;;  %v64_v8 = vpack.c.bf16 %v63_v4, %v62_v3  ;;  %v730_v9 = vld [vmem:[#allocation2 + $0x10] ss:$8 sps:$4 sm:$0xff]   ;;  %276 = vmatprep.mubr.bf16.mxu1 %v853_v22 }
  0x2a   :  { %687 = vmatprep.subr.bf16.mxu0 %v851_v0  ;;  %244 = vmatprep.subr.bf16.mxu1 %v725_v5  ;;  %v731_v10 = vld [vmem:[#allocation2 + $0x24] ss:$8 sps:$4 sm:$0xff]   ;;  %v733_v11 = vld [vmem:[#allocation2 + $0x20] ss:$8 sps:$4 sm:$0xff]   ;;  %v734_v12 = vld [vmem:[#allocation2 + $0x34] ss:$8 sps:$4 sm:$0xff]  }
  0x2b   :  { %245 = vmatpush1.bf16.msra.mxu1 %v727_v6  ;;  %v736_v13 = vld [vmem:[#allocation2 + $0x30] ss:$8 sps:$4 sm:$0xff]   ;;  %v737_v14 = vld [vmem:[#allocation2 + $0x44] ss:$8 sps:$4 sm:$0xff]   ;;  %v739_v15 = vld [vmem:[#allocation2 + $0x40] ss:$8 sps:$4 sm:$0xff]  }
  0x2c   :  { %246 = vmatprep.subr.bf16.mxu1 %v728_v7  ;;  %v740_v16 = vld [vmem:[#allocation2 + $0x54] ss:$8 sps:$4 sm:$0xff]   ;;  %v742_v17 = vld [vmem:[#allocation2 + $0x50] ss:$8 sps:$4 sm:$0xff]   ;;  %v743_v18 = vld [vmem:[#allocation2 + $0x64] ss:$8 sps:$4 sm:$0xff]  }
  0x2d   :  { %688 = vmatpush3.bf16.msra.mxu0 %v724_v2  ;;  %v745_v19 = vld [vmem:[#allocation2 + $0x60] ss:$8 sps:$4 sm:$0xff]   ;;  %v746_v20 = vld [vmem:[#allocation2 + $0x74] ss:$8 sps:$4 sm:$0xff]   ;;  %v748_v21 = vld [vmem:[#allocation2 + $0x70] ss:$8 sps:$4 sm:$0xff]  }
  0x2e   :  { %v749_v23 = vld [vmem:[#allocation5 + $0x40] sm:$0xff]   ;;  %v751_v25 = vld [vmem:[#allocation5 + $0x48] sm:$0xff]   ;;  %v753_v27 = vld [vmem:[#allocation5 + $0x50] sm:$0xff]   ;;  %v155_v55 = vshrl.u32 %v154_v54, 7  ;;  %vm584_vm2 = vcmask 130048  }
  0x2f   :  { %247 = vmatpush1.bf16.msra.mxu1 %v730_v9  ;;  %v750_v24 = vld [vmem:[#allocation5] sm:$0xff]   ;;  %654 = vmatprep.subr.bf16.mxu0 %v749_v23  ;;  %v752_v26 = vld [vmem:[#allocation5 + $0x8] sm:$0xff]   ;;  %v754_v28 = vld [vmem:[#allocation5 + $0x10] sm:$0xff]  }
  0x30   :  { %690 = vmatmul.mubr.msk.bf16.vlgmr.msra.gmra.mrb[0].mxu0 %vm88_vm1, %v64_v8  ;;  %248 = vmatprep.subr.bf16.mxu1 %v731_v10  ;;  %v755_v29 = vld [vmem:[#allocation5 + $0x58] sm:$0xff]   ;;  %v757_v31 = vld [vmem:[#allocation5 + $0x60] sm:$0xff]   ;;  %v759_v33 = vld [vmem:[#allocation5 + $0x68] sm:$0xff]   ;;  %v156_v56 = vsub.s32 0, %v155_v55  ;;  %v160_v58 = vsub.s32 1, %v155_v55 }
  0x31   :  { %655 = vmatpush3.bf16.msra.mxu0 %v750_v24  ;;  %v756_v30 = vld [vmem:[#allocation5 + $0x18] sm:$0xff]   ;;  %v758_v32 = vld [vmem:[#allocation5 + $0x20] sm:$0xff]   ;;  %v760_v44 = vld [vmem:[#allocation5 + $0x28] sm:$0xff]  }
  0x32   :  { %656 = vmatprep.subr.bf16.mxu0 %v751_v25  ;;  %v605_v34 = vld [vmem:[%s1011_s2] ss:$0 sm:$0xff]  ;;  %v761_v45 = vld [vmem:[#allocation5 + $0x70] sm:$0xff]   ;;  %v763_v47 = vld [vmem:[#allocation5 + $0x78] sm:$0xff]  }
  0x33   :  { %249 = vmatpush1.bf16.msra.mxu1 %v733_v11  ;;  %v762_v46 = vld [vmem:[#allocation5 + $0x30] sm:$0xff]   ;;  %v764_v48 = vld [vmem:[#allocation5 + $0x38] sm:$0xff]   ;;  %v765_v49 = vld [vmem:[%s1016_s7] sm:$0xff]  }
  0x34   :  { %250 = vmatprep.subr.bf16.mxu1 %v734_v12  ;;  %v766_v50 = vld [vmem:[%s1016_s7 + $0x8] sm:$0xff]   ;;  %v767_v51 = vld [vmem:[%s1016_s7 + $0x10] sm:$0xff]   ;;  %v768_v52 = vld [vmem:[%s1016_s7 + $0x18] sm:$0xff]  }
  0x35   :  { %657 = vmatpush3.bf16.msra.mxu0 %v752_v26  ;;  %v769_v53 = vld [vmem:[%s1016_s7 + $0x20] sm:$0xff]   ;;  %v770_v12 = vld [vmem:[%s1016_s7 + $0x28] sm:$0xff]  }
  0x36   :  { %658 = vmatprep.subr.bf16.mxu0 %v753_v27  ;;  %v152_v57 = vld [vmem:[%s1013_s4] sm:$0x3] }
  0x37   :  { %251 = vmatpush1.bf16.msra.mxu1 %v736_v13  ;;  %v157_v59 = vrot.slane %v152_v57, %v156_v56  ;;  %v161_v60 = vrot.slane %v152_v57, %v160_v58  ;;  %v771_v13 = vld [vmem:[%s1016_s7 + $0x30] sm:$0xff]   ;;  %v642_v26 = vld [vmem:[%s1017_s8] ss:$0 sm:$0xff] }
  0x38   :  { %252 = vmatprep.subr.bf16.mxu1 %v737_v14  ;;  %v772_v14 = vld [vmem:[%s1016_s7 + $0x38] sm:$0xff]   ;;  %s854_s7 = smov [#allocation7]  }
  0x39   :  { %659 = vmatpush3.bf16.msra.mxu0 %v754_v28  ;;  %s592_s23 = sshll.u32 %s854_s7, 4  ;;  %s593_s23 = int_to_ptr.vmem [resolvable:$true] %s592_s23 }
  0x3a   :  { %660 = vmatprep.subr.bf16.mxu0 %v755_v29  ;;  %p822_p3 = scmp.lt.s32.totalorder %s593_s23, %s593_s23 }
  0x3b   :  { %253 = vmatpush1.bf16.msra.mxu1 %v739_v15 }
  0x3c   :  { %254 = vmatprep.subr.bf16.mxu1 %v740_v16  ;;  %v625_v16 = vld [vmem:[%s1015_s6] ss:$0 sm:$0xff]  ;;  %s817_s6 = scalar_lea.vmem %s593_s23, 256 }
  0x3d   :  { %661 = vmatpush3.bf16.msra.mxu0 %v756_v30  ;;  %p818_p2 = scmp.ne.s32.totalorder %s593_s23, %s817_s6  ;;  %p823_p4 = scmp.lt.s32.totalorder %s817_s6, %s817_s6 }
  0x3e   :  { %662 = vmatprep.subr.bf16.mxu0 %v757_v31 }
  0x3f   :  { %255 = vmatpush1.bf16.msra.mxu1 %v742_v17  ;;  %p824_p5 = por %p823_p4, %p822_p3 }
  0x40   :  { %256 = vmatprep.subr.bf16.mxu1 %v743_v18 }
  0x41   :  { %663 = vmatpush3.bf16.msra.mxu0 %v758_v32  ;;  %p825_p6 = pnand %p824_p5, %p818_p2 }
  0x42   :  { %664 = vmatprep.subr.bf16.mxu0 %v759_v33 }
  0x43   :  { %257 = vmatpush1.bf16.msra.mxu1 %v745_v19 }
  0x44   :  { %258 = vmatprep.subr.bf16.mxu1 %v746_v20 }
  0x45   :  { %665 = vmatpush3.bf16.msra.mxu0 %v760_v44 }
  0x46   :  { %666 = vmatprep.subr.bf16.mxu0 %v761_v45 }
  0x47   :  { %259 = vmatpush1.bf16.msra.mxu1 %v748_v21 }
  0x48   :  { %693 = vmatprep.subr.bf16.mxu1 %v851_v0 }
  0x49   :  { %667 = vmatpush3.bf16.msra.mxu0 %v762_v46 }
  0x4a   :  { %668 = vmatprep.subr.bf16.mxu0 %v763_v47 }
  0x4d   :  { %669 = vmatpush3.bf16.msra.mxu0 %v764_v48 }
 0x103   :  { %v126_v35 = vpop.f32.mrb[0].mxu0 }
 0x104   :  { %v127_v36 = vadd.f32 %v605_v34, %v126_v35  ;;  %v691_v37 = vpop.f32.mrb[1].mxu0 }
 0x105   :  { %v129_v38 = vpop.f32.mrb[2].mxu0 }
 0x106   :  { %v130_v39 = vadd.f32 %v605_v34, %v129_v38  ;;  %v692_v40 = vpop.f32.mrb[3].mxu0  ;;  %v133_v41 = vmax.f32 %v127_v36, 0.0 }
 0x108   :  { %v134_v42 = vmax.f32 %v130_v39, 0.0 }
 0x10a   :  { %v135_v43 = vpack.c.bf16 %v134_v42, %v133_v41 }
 0x10c   :  { %277 = vmatmul.mubr.bf16.vlgmr.msra.gmra.mrb[0].mxu1 %v135_v43 }
 0x10d   :  { %709 = vmatprep.mubr.msk.bf16.mxu1 %vm852_vm0, %v851_v0  ;;  %694 = vmatpush3.bf16.msra.mxu1 %v765_v49 }
 0x10e   :  { %695 = vmatprep.subr.bf16.mxu1 %v851_v0 }
 0x111   :  { %696 = vmatpush3.bf16.msra.mxu1 %v766_v50 }
 0x112   :  { %697 = vmatprep.subr.bf16.mxu1 %v851_v0 }
 0x115   :  { %698 = vmatpush3.bf16.msra.mxu1 %v767_v51 }
 0x116   :  { %699 = vmatprep.subr.bf16.mxu1 %v851_v0 }
 0x119   :  { %700 = vmatpush3.bf16.msra.mxu1 %v768_v52 }
 0x11a   :  { %701 = vmatprep.subr.bf16.mxu1 %v851_v0 }
 0x11d   :  { %702 = vmatpush3.bf16.msra.mxu1 %v769_v53 }
 0x11e   :  { %703 = vmatprep.subr.bf16.mxu1 %v851_v0 }
 0x121   :  { %704 = vmatpush3.bf16.msra.mxu1 %v770_v12 }
 0x122   :  { %705 = vmatprep.subr.bf16.mxu1 %v851_v0 }
 0x125   :  { %706 = vmatpush3.bf16.msra.mxu1 %v771_v13 }
 0x126   :  { %707 = vmatprep.subr.bf16.mxu1 %v851_v0 }
 0x129   :  { %708 = vmatpush3.bf16.msra.mxu1 %v772_v14 }
 0x1df   :  { %v278_v61 = vpop.f32.mrb[0].mxu1 }
 0x1e0   :  { %v279_v62 = vadd.f32 %v278_v61, %v157_v59  ;;  %v280_v63 = vpop.f32.mrb[1].mxu1 }
 0x1e1   :  { %v281_v1 = vadd.f32 %v280_v63, %v161_v60  ;;  %v282_v2 = vpop.f32.mrb[2].mxu1 }
 0x1e2   :  { %v283_v3 = vadd.f32 %v282_v2, %v157_v59  ;;  %v284_v4 = vpop.f32.mrb[3].mxu1  ;;  %v287_v6 = vmax.f32 %v279_v62, 0.0 }
 0x1e3   :  { %v285_v5 = vadd.f32 %v284_v4, %v161_v60  ;;  %v288_v8 = vmax.f32 %v281_v1, 0.0 }
 0x1e4   :  { %v289_v7 = vmax.f32 %v283_v3, 0.0 }
 0x1e5   :  { %v290_v9 = vmax.f32 %v285_v5, 0.0 }
 0x1e6   :  { %v291_v10 = vpack.c.bf16 %v289_v7, %v287_v6 }
 0x1e7   :  { %v292_v11 = vpack.c.bf16 %v290_v9, %v288_v8 }
 0x1e9   :  { %460 = vmatprep.mubr.bf16.mxu0 %v292_v11 }
 0x1ea   :  { %461 = vmatmul.mubr.bf16.vlgmr.msra.gmra.mrb[4].mxu0 %v291_v10 }
 0x2bd   :  { %v670_v15 = vpop.f32.mrb[4].mxu0 }
 0x2be   :  { %v671_v17 = vpop.f32.mrb[5].mxu0 }
 0x2bf   :  { %v672_v18 = vadd.f32 %v671_v17, %v670_v15  ;;  %v673_v19 = vpop.f32.mrb[6].mxu0 }
 0x2c0   :  { %v674_v20 = vpop.f32.mrb[7].mxu0 }
 0x2c1   :  { %v463_v21 = vadd.f32 %v672_v18, %v625_v16  ;;  %v675_v22 = vadd.f32 %v674_v20, %v673_v19 }
 0x2c3   :  { %v466_v23 = vadd.f32 %v675_v22, %v625_v16  ;;  %v469_v24 = vmax.f32 %v463_v21, 0.0 }
 0x2c5   :  { %v470_v25 = vmax.f32 %v466_v23, 0.0 }
 0x2c7   :  { %v471_v0 = vpack.c.bf16 %v470_v25, %v469_v24 }
 0x2c9   :  { %710 = vmatmul.mubr.bf16.vlgmr.msra.gmra.mrb[4].mxu1 %v471_v0 }
 0x39c   :  { %v577_v27 = vpop.f32.mrb[4].mxu1 }
 0x39d   :  { %v578_v28 = vadd.f32 %v642_v26, %v577_v27  ;;  %v711_v29 = vpop.f32.mrb[5].mxu1 }
 0x39e   :  { %v580_v30 = vpop.f32.mrb[6].mxu1 }
 0x39f   :  { %v581_v31 = vadd.f32 %v642_v26, %v580_v30  ;;  %v712_v32 = vpop.f32.mrb[7].mxu1  ;;  %585 = vst.msk [vmem:[#allocation7] sm:$0xff] %vm584_vm2, %v578_v28 }
 0x3a1   :  { %586 = vst.msk [vmem:[#allocation7 + $0x8] sm:$0xff] %vm584_vm2, %v581_v31 }
 0x3a2   :  { %828 = shalt.err (!%p825_p6)
}
 0x3a3   :  { %s829_s1 = scalar_lea.hbm %s1018_s9, 256 }
 0x3a4   :  { %p830_p7 = scmp.ne.s32.totalorder %s1018_s9, %s829_s1  ;;  %p833_p8 = scmp.lt.u32.totalorder %s829_s1, %s1018_s9 }
 0x3a6   :  { %p835_p9 = pnand %p833_p8, %p830_p7 }
 0x3a8   :  { %838 = shalt.err (!%p835_p9)
}
 0x3a9   :  { %598 = dma.vmem_to_hbm [thread:$0]  %s593_s23, 256, %s1018_s9, [#allocation4], %s846_s19, %s846_s19, %s847_s20  }
 0x3aa   :  { %843 = dma.done.wait [#allocation4], 256  }
 0x3ab   :  { %844 = vsyncadd [#allocation4], 4294967040 }
 0x3ac   :  { %602 = vsyncpa [#allocation3], 1 }
 0x3ad   :  { %603 = vsyncpa [#allocation6], 1 }
 0x3ae   :  { %604 = vsyncpa [#allocation4], 1 }

</bundles_post_ra>
